<compile_context>
chip_gen: v7x
topology: tpu7x:2x2x1
jax: 0.10.0
libtpu: 0.0.40
codegen_flags: <defaults>
</compile_context>

<pallas_src>
import math

import jax
import jax.numpy as jnp
from jax.experimental import pallas as pl
from jax.experimental.pallas import tpu as pltpu

_GELU_C1 = math.sqrt(2.0 / math.pi)            # sqrt(2/pi)
_GELU_C2 = _GELU_C1 * 0.044715                 # sqrt(2/pi) * 0.044715


def _gelu_tanh_f32(h):
    # x * 0.5 * (1 + tanh(sqrt(2/pi) * (x + 0.044715 x^3)))
    #   == h * (0.5 + 0.5 * tanh(h * (C1 + C2 * h^2)))   (constants folded)
    h2 = h * h
    t = jnp.tanh(h * (_GELU_C1 + _GELU_C2 * h2))
    return h * (0.5 + 0.5 * t)


# --------------------------- kernel bodies ---------------------------

def _ff_kernel_resident(x_ref, w1_ref, b1_ref, w2_ref, b2_ref, o_ref):
    # x_ref: (tm, E); w1_ref: (E, H); b1_ref: (1, H); w2_ref: (H, E); b2_ref: (1, E)
    h = jnp.dot(x_ref[...], w1_ref[...], preferred_element_type=jnp.float32)
    h = h + b1_ref[...].astype(jnp.float32)
    g = _gelu_tanh_f32(h)
    out = jnp.dot(g.astype(w2_ref.dtype), w2_ref[...],
                  preferred_element_type=jnp.float32)
    o_ref[...] = (out + b2_ref[...].astype(jnp.float32)).astype(o_ref.dtype)


def _ff_kernel_tiled(x_ref, w1_ref, b1_ref, w2_ref, b2_ref, o_ref, acc_ref):
    # x_ref: (tm, E); w1_ref: (E, th); b1_ref: (1, th); w2_ref: (th, E);
    # b2_ref: (1, E); o_ref: (tm, E); acc_ref: (tm, E) f32, resident across k.
    k = pl.program_id(1)

    h = jnp.dot(x_ref[...], w1_ref[...], preferred_element_type=jnp.float32)
    h = h + b1_ref[...].astype(jnp.float32)
    g = _gelu_tanh_f32(h)
    partial = jnp.dot(g.astype(w2_ref.dtype), w2_ref[...],
                      preferred_element_type=jnp.float32)

    @pl.when(k == 0)
    def _first():
        # Direct store of the first partial product with b2 folded in:
        # no zero-fill, no finalize add.
        acc_ref[...] = partial + b2_ref[...].astype(jnp.float32)

    @pl.when(k != 0)
    def _accum():
        acc_ref[...] += partial

    @pl.when(k == pl.num_programs(1) - 1)
    def _finalize():
        o_ref[...] = acc_ref[...].astype(o_ref.dtype)


# --------------------------- planning ---------------------------

def _vmem_capacity_bytes():
    """Physical VMEM per TensorCore (128 MiB v5e/v6e, 64 MiB v7x); safe fallback."""
    try:
        info = pltpu.get_tpu_info()
        cap = getattr(info, "vmem_capacity_bytes", None)
        if cap:
            return int(cap)
    except Exception:
        pass
    return 64 * 1024 * 1024   # conservative (v7x per-TC size)


def _round_up(v, m):
    return ((v + m - 1) // m) * m


def _plan(M, E, H, x_itemsize, w_itemsize, budget):
    """Pick ('resident', tm, None) or ('tiled', tm, th) under a VMEM byte budget."""
    tm_candidates = (1024, 768, 512, 384, 256, 128)

    # ---- resident-weights path: W1/W2/biases stay in VMEM for the whole kernel ----
    w_resident = (2 * E * H + H + E) * w_itemsize
    for tm in tm_candidates:
        tmc = min(tm, M)
        io = 4 * tmc * E * x_itemsize                      # double-buffered x + out
        tmp = tmc * H * (4 + w_itemsize) + tmc * E * 4     # f32 h, casted g, f32 result
        if w_resident + io + tmp <= budget:
            # Megacore: keep >= 2 row tiles when M is large enough (v7x has 2 TCs).
            if tmc >= M and M >= 512:
                tmc = min(tmc, _round_up((M + 1) // 2, 128))
            return "resident", tmc, None

    # ---- tiled hidden axis (weights streamed as (E,th)/(th,E) slabs) ----
    th_candidates = [t for t in (1024, 512, 256, 128) if t <= H and H % t == 0]
    if not th_candidates:
        th_candidates = [H]
    for tm in tm_candidates:
        tmc = min(tm, M)
        for th in th_candidates:
            io = 4 * tmc * E * x_itemsize                  # double-buffered x + out
            acc = tmc * E * 4                              # f32 accumulator scratch
            w_slabs = 2 * (2 * E * th + th) * w_itemsize + E * w_itemsize
            tmp = tmc * th * (4 + w_itemsize)              # f32 h slab + casted g slab
            if io + acc + w_slabs + tmp <= budget:
                return "tiled", tmc, th
    return "tiled", min(128, M), th_candidates[-1]


# --------------------------- wrapper ---------------------------

def feed_forward(x, w1, b1, w2, b2, *, tm=None, th=None):
    """x: (B, S, E); w1: (E, H); b1: (H,); w2: (H, E); b2: (E,)  with H = 4*E."""
    B, S, E = x.shape
    H = w1.shape[1]
    M = B * S
    xf = x.reshape(M, E)
    b1_2d = b1.reshape(1, H)
    b2_2d = b2.reshape(1, E)

    # Generation-aware VMEM limit: ~82% of physical per-TC VMEM
    # (≈105 MiB on v5e/v6e, ≈52 MiB on v7x), leaving headroom for compiler scratch.
    cap = _vmem_capacity_bytes()
    vmem_limit = max(32 * 1024 * 1024,
                     min(cap - 12 * 1024 * 1024, int(cap * 0.82)))
    budget = int(vmem_limit * 0.9)

    mode, tm_p, th_p = _plan(M, E, H, x.dtype.itemsize, w1.dtype.itemsize, budget)
    if tm is None:
        tm = tm_p
    tm = min(tm, M)
    if th is None:
        th = th_p

    n_row_tiles = pl.cdiv(M, tm)
    w_passes = 1 if mode == "resident" else n_row_tiles
    x_isz = x.dtype.itemsize
    w_isz = w1.dtype.itemsize
    cost = pl.CostEstimate(
        flops=4 * M * E * H,                           # two matmuls
        transcendentals=M * H,                         # tanh per hidden activation
        bytes_accessed=(2 * M * E * x_isz              # x in + out
                        + w_passes * 2 * E * H * w_isz # W1 + W2 (re-)streaming
                        + w_passes * (H + E) * w_isz), # biases
    )

    if mode == "resident":
        grid = (n_row_tiles,)
        in_specs = [
            pl.BlockSpec((tm, E), lambda i: (i, 0)),   # x row tile
            pl.BlockSpec((E, H), lambda i: (0, 0)),    # W1, resident (fetched once)
            pl.BlockSpec((1, H), lambda i: (0, 0)),    # b1
            pl.BlockSpec((H, E), lambda i: (0, 0)),    # W2, resident
            pl.BlockSpec((1, E), lambda i: (0, 0)),    # b2
        ]
        out_specs = pl.BlockSpec((tm, E), lambda i: (i, 0))
        scratch_shapes = []
        kernel = _ff_kernel_resident
        dims = ("parallel",)
    else:
        grid = (n_row_tiles, H // th)
        in_specs = [
            pl.BlockSpec((tm, E), lambda i, k: (i, 0)),   # x row tile (reused over k)
            pl.BlockSpec((E, th), lambda i, k: (0, k)),   # W1 hidden slab
            pl.BlockSpec((1, th), lambda i, k: (0, k)),   # b1 hidden slab
            pl.BlockSpec((th, E), lambda i, k: (k, 0)),   # W2 hidden slab
            pl.BlockSpec((1, E), lambda i, k: (0, 0)),    # b2 (constant, tiny)
        ]
        out_specs = pl.BlockSpec((tm, E), lambda i, k: (i, 0))
        scratch_shapes = [pltpu.VMEM((tm, E), jnp.float32)]
        kernel = _ff_kernel_tiled
        dims = ("parallel", "arbitrary")

    out = pl.pallas_call(
        kernel,
        out_shape=jax.ShapeDtypeStruct((M, E), x.dtype),
        grid_spec=pltpu.PrefetchScalarGridSpec(
            num_scalar_prefetch=0,
            grid=grid,
            in_specs=in_specs,
            out_specs=out_specs,
            scratch_shapes=scratch_shapes,
        ),
        compiler_params=pltpu.CompilerParams(
            dimension_semantics=dims,
            vmem_limit_bytes=vmem_limit,
        ),
        cost_estimate=cost,
    )(xf, w1, b1_2d, w2, b2_2d)

    return out.reshape(B, S, E)


# --------------------------- reference + test ---------------------------

def _ref_feed_forward(x, w1, b1, w2, b2):
    h = jnp.einsum("bse,eh->bsh", x, w1) + b1
    c = math.sqrt(2.0 / math.pi)
    g = h * 0.5 * (1.0 + jnp.tanh(c * (h + 0.044715 * h ** 3)))
    return jnp.einsum("bsh,he->bse", g, w2) + b2


if __name__ == "__main__":
    # cfg = {'emb_dim': 32}; hidden = 4 * emb_dim = 128
    B, S, E = 2, 8, 32
    H = 4 * E

    key = jax.random.PRNGKey(0)
    kx, k1, kb1, k2, kb2 = jax.random.split(key, 5)

    x = jax.random.normal(kx, (B, S, E), dtype=jnp.float32)

    # Deterministic init mimicking nn.Linear's uniform(-1/sqrt(in), 1/sqrt(in)).
    lim1 = 1.0 / math.sqrt(E)
    lim2 = 1.0 / math.sqrt(H)
    w1 = jax.random.uniform(k1, (E, H), minval=-lim1, maxval=lim1, dtype=jnp.float32)
    b1 = jax.random.uniform(kb1, (H,), minval=-lim1, maxval=lim1, dtype=jnp.float32)
    w2 = jax.random.uniform(k2, (H, E), minval=-lim2, maxval=lim2, dtype=jnp.float32)
    b2 = jax.random.uniform(kb2, (E,), minval=-lim2, maxval=lim2, dtype=jnp.float32)

    y = feed_forward(x, w1, b1, w2, b2)
    y = jax.block_until_ready(y)

    y_ref = _ref_feed_forward(x, w1, b1, w2, b2)
    assert y.shape == (B, S, E)
    assert jnp.allclose(y, y_ref, atol=1e-5, rtol=1e-5)

    print("KERNEL_OK")
</pallas_src>

<mosaic_0001>
module attributes {stable_mosaic.version = 11 : i64} {
  func.func @_ff_kernel_resident(%arg0: i32, %arg1: memref<16x32xf32, #tpu.memory_space<vmem>>, %arg2: memref<32x128xf32, #tpu.memory_space<vmem>>, %arg3: memref<1x128xf32, #tpu.memory_space<vmem>>, %arg4: memref<128x32xf32, #tpu.memory_space<vmem>>, %arg5: memref<1x32xf32, #tpu.memory_space<vmem>>, %arg6: memref<16x32xf32, #tpu.memory_space<vmem>>) attributes {dimension_semantics = [#tpu.dimension_semantics<parallel>], iteration_bounds = array<i64: 1>, scalar_prefetch = 0 : i64, scratch_operands = 0 : i64, tpu.core_type = #tpu.core_type<tc>, window_params = [{transform_indices = @transform_0, window_bounds = array<i64: 16, 32>}, {pipeline_mode = #tpu.pipeline_mode<synchronous>, transform_indices = @transform_1, window_bounds = array<i64: 32, 128>}, {pipeline_mode = #tpu.pipeline_mode<synchronous>, transform_indices = @transform_2, window_bounds = array<i64: 1, 128>}, {pipeline_mode = #tpu.pipeline_mode<synchronous>, transform_indices = @transform_3, window_bounds = array<i64: 128, 32>}, {pipeline_mode = #tpu.pipeline_mode<synchronous>, transform_indices = @transform_4, window_bounds = array<i64: 1, 32>}, {transform_indices = @transform_5, window_bounds = array<i64: 16, 32>}]} {
    %c0 = arith.constant 0 : index
    %c0_0 = arith.constant 0 : index
    %0 = vector.load %arg1[%c0, %c0_0] : memref<16x32xf32, #tpu.memory_space<vmem>>, vector<16x32xf32>
    %c0_1 = arith.constant 0 : index
    %c0_2 = arith.constant 0 : index
    %1 = vector.load %arg2[%c0_1, %c0_2] : memref<32x128xf32, #tpu.memory_space<vmem>>, vector<32x128xf32>
    %cst = arith.constant dense<0.000000e+00> : vector<16x128xf32>
    %2 = tpu.matmul %0, %1, %cst {dimension_numbers = #tpu.dot_dimension_numbers<[1], [0], [0], [1], [0, 0, 1, 1], [], []>} : vector<16x32xf32>, vector<32x128xf32>, vector<16x128xf32> -> vector<16x128xf32>
    %c0_3 = arith.constant 0 : index
    %c0_4 = arith.constant 0 : index
    %3 = vector.load %arg3[%c0_3, %c0_4] : memref<1x128xf32, #tpu.memory_space<vmem>>, vector<1x128xf32>
    %4 = vector.broadcast %3 : vector<1x128xf32> to vector<16x128xf32>
    %5 = arith.addf %2, %4 : vector<16x128xf32>
    %6 = arith.mulf %5, %5 : vector<16x128xf32>
    %cst_5 = arith.constant 0.0356774069 : f32
    %7 = vector.broadcast %cst_5 : f32 to vector<16x128xf32>
    %8 = arith.mulf %7, %6 : vector<16x128xf32>
    %cst_6 = arith.constant 0.797884583 : f32
    %9 = vector.broadcast %cst_6 : f32 to vector<16x128xf32>
    %10 = arith.addf %9, %8 : vector<16x128xf32>
    %11 = arith.mulf %5, %10 : vector<16x128xf32>
    %12 = math.tanh %11 : vector<16x128xf32>
    %cst_7 = arith.constant 5.000000e-01 : f32
    %13 = vector.broadcast %cst_7 : f32 to vector<16x128xf32>
    %14 = arith.mulf %13, %12 : vector<16x128xf32>
    %cst_8 = arith.constant 5.000000e-01 : f32
    %15 = vector.broadcast %cst_8 : f32 to vector<16x128xf32>
    %16 = arith.addf %15, %14 : vector<16x128xf32>
    %17 = arith.mulf %5, %16 : vector<16x128xf32>
    %c0_9 = arith.constant 0 : index
    %c0_10 = arith.constant 0 : index
    %18 = vector.load %arg4[%c0_9, %c0_10] : memref<128x32xf32, #tpu.memory_space<vmem>>, vector<128x32xf32>
    %cst_11 = arith.constant dense<0.000000e+00> : vector<16x32xf32>
    %19 = tpu.matmul %17, %18, %cst_11 {dimension_numbers = #tpu.dot_dimension_numbers<[1], [0], [0], [1], [0, 0, 1, 1], [], []>} : vector<16x128xf32>, vector<128x32xf32>, vector<16x32xf32> -> vector<16x32xf32>
    %c0_12 = arith.constant 0 : index
    %c0_13 = arith.constant 0 : index
    %20 = vector.load %arg5[%c0_12, %c0_13] : memref<1x32xf32, #tpu.memory_space<vmem>>, vector<1x32xf32>
    %21 = vector.broadcast %20 : vector<1x32xf32> to vector<16x32xf32>
    %22 = arith.addf %19, %21 : vector<16x32xf32>
    %c0_14 = arith.constant 0 : index
    %c0_15 = arith.constant 0 : index
    %23 = vector.load %arg6[%c0_14, %c0_15] : memref<16x32xf32, #tpu.memory_space<vmem>>, vector<16x32xf32>
    tpu.vector_store %arg6[%c0_14, %c0_15], %22 {strides = array<i32>} : memref<16x32xf32, #tpu.memory_space<vmem>>, vector<16x32xf32>,
    return
  }
  func.func @transform_0(%arg0: i32) -> (i32, i32) {
    %c0_i32 = arith.constant 0 : i32
    %c0_i32_0 = arith.constant 0 : i32
    return %arg0, %c0_i32 : i32, i32
  }
  func.func @transform_1(%arg0: i32) -> (i32, i32) {
    %c0_i32 = arith.constant 0 : i32
    %c0_i32_0 = arith.constant 0 : i32
    %c0_i32_1 = arith.constant 0 : i32
    return %c0_i32, %c0_i32_0 : i32, i32
  }
  func.func @transform_2(%arg0: i32) -> (i32, i32) {
    %c0_i32 = arith.constant 0 : i32
    %c0_i32_0 = arith.constant 0 : i32
    %c0_i32_1 = arith.constant 0 : i32
    return %c0_i32, %c0_i32_0 : i32, i32
  }
  func.func @transform_3(%arg0: i32) -> (i32, i32) {
    %c0_i32 = arith.constant 0 : i32
    %c0_i32_0 = arith.constant 0 : i32
    %c0_i32_1 = arith.constant 0 : i32
    return %c0_i32, %c0_i32_0 : i32, i32
  }
  func.func @transform_4(%arg0: i32) -> (i32, i32) {
    %c0_i32 = arith.constant 0 : i32
    %c0_i32_0 = arith.constant 0 : i32
    %c0_i32_1 = arith.constant 0 : i32
    return %c0_i32, %c0_i32_0 : i32, i32
  }
  func.func @transform_5(%arg0: i32) -> (i32, i32) {
    %c0_i32 = arith.constant 0 : i32
    %c0_i32_0 = arith.constant 0 : i32
    return %arg0, %c0_i32 : i32, i32
  }
}

</mosaic_0001>

<bundles_post_ra>
// kernel: tpu_custom_call.1
= control target key start
LH: loop header
LB: loop body
LE: loop exit
PB: predicated region body
PF: predicated region fallthrough
CT: control target
= control target key end

     0   :  { %vm34_vm0 = vcmask 261120   ;;  %s514_s0 = inlined_call_operand.vmem [shape: f32[16,32], index: 0, kind: input, shape index: {}]   ;;  %s515_s1 = inlined_call_operand.vmem [shape: f32[32,128], index: 1, kind: input, shape index: {}]   ;;  %s516_s2 = inlined_call_operand.vmem [shape: f32[1,128], index: 2, kind: input, shape index: {}]   ;;  %s517_s3 = inlined_call_operand.vmem [shape: f32[128,32], index: 3, kind: input, shape index: {}]   ;;  %s518_s4 = inlined_call_operand.vmem [shape: f32[1,32], index: 4, kind: input, shape index: {}]   ;;  %s519_s5 = inlined_call_operand.hbm [shape: f32[16,32], index: 5, kind: output, shape index: {}]  }
   0x1   :  { %v23_v0 = vld [vmem:[%s515_s1] sm:$0xff]  ;;  %v24_v1 = vld [vmem:[%s515_s1 + $0x8] sm:$0xff]  ;;  %v25_v2 = vld [vmem:[%s515_s1 + $0x10] sm:$0xff] }
   0x2   :  { %v322_v3 = vpack.c.bf16 %v24_v1, %v23_v0  ;;  %v26_v4 = vld [vmem:[%s515_s1 + $0x18] sm:$0xff]  ;;  %v21_v5 = vld [vmem:[%s514_s0] sm:$0xff]  ;;  %v133_v8 = vld [vmem:[%s517_s3 + $0x8] sm:$0xff] }
   0x3   :  { %v326_v6 = vpack.c.bf16 %v26_v4, %v25_v2  ;;  %284 = vmatprep.mubr.msk.f32.mxu0 %vm34_vm0, %v21_v5  ;;  %v132_v7 = vld [vmem:[%s517_s3] sm:$0xff] }
   0x4   :  { %10 = vsyncpa [#allocation3], 0  ;;  %323 = vmatprep.subr.bf16.mxu0 %v322_v3  ;;  %v330_v9 = vpack.c.bf16 %v133_v8, %v132_v7  ;;  %v22_v10 = vld [vmem:[%s514_s0 + $0x8] sm:$0xff]  ;;  %v134_v11 = vld [vmem:[%s517_s3 + $0x10] sm:$0xff]  ;;  %s393_s11 = smov [#allocation2]  }
   0x5   :  { %325 = vmatpush3.bf16.msra.mxu0 %v322_v3  ;;  %v135_v12 = vld [vmem:[%s517_s3 + $0x18] sm:$0xff]  ;;  %v136_v14 = vld [vmem:[%s517_s3 + $0x20] sm:$0xff]  ;;  %v137_v15 = vld [vmem:[%s517_s3 + $0x28] sm:$0xff]  ;;  %s237_s12 = sshll.u32 %s393_s11, 4  ;;  %s238_s12 = int_to_ptr.vmem [resolvable:$true] %s237_s12 }
   0x6   :  { %327 = vmatprep.subr.bf16.mxu0 %v326_v6  ;;  %331 = vmatprep.subr.bf16.mxu1 %v330_v9  ;;  %v334_v13 = vpack.c.bf16 %v135_v12, %v134_v11  ;;  %v338_v16 = vpack.c.bf16 %v137_v15, %v136_v14  ;;  %v138_v17 = vld [vmem:[%s517_s3 + $0x30] sm:$0xff]  ;;  %v139_v18 = vld [vmem:[%s517_s3 + $0x38] sm:$0xff]  ;;  %v140_v20 = vld [vmem:[%s517_s3 + $0x40] sm:$0xff]  ;;  %s369_s13 = scalar_lea.vmem %s238_s12, 256  ;;  %p374_p1 = scmp.lt.s32.totalorder %s238_s12, %s238_s12 }
   0x7   :  { %333 = vmatpush3.bf16.msra.mxu1 %v330_v9  ;;  %v342_v19 = vpack.c.bf16 %v139_v18, %v138_v17  ;;  %v141_v21 = vld [vmem:[%s517_s3 + $0x48] sm:$0xff]  ;;  %v142_v22 = vld [vmem:[%s517_s3 + $0x50] sm:$0xff]  ;;  %v143_v24 = vld [vmem:[%s517_s3 + $0x58] sm:$0xff]  ;;  %p370_p0 = scmp.ne.s32.totalorder %s238_s12, %s369_s13  ;;  %p375_p2 = scmp.lt.s32.totalorder %s369_s13, %s369_s13 }
   0x8   :  { %335 = vmatprep.subr.bf16.mxu1 %v334_v13  ;;  %v346_v23 = vpack.c.bf16 %v141_v21, %v140_v20  ;;  %v350_v25 = vpack.c.bf16 %v143_v24, %v142_v22  ;;  %v144_v26 = vld [vmem:[%s517_s3 + $0x60] sm:$0xff]  ;;  %v145_v27 = vld [vmem:[%s517_s3 + $0x68] sm:$0xff]  ;;  %v146_v29 = vld [vmem:[%s517_s3 + $0x70] sm:$0xff] }
   0x9   :  { %329 = vmatpush3.bf16.msra.mxu0 %v326_v6  ;;  %v354_v28 = vpack.c.bf16 %v145_v27, %v144_v26  ;;  %v147_v30 = vld [vmem:[%s517_s3 + $0x78] sm:$0xff]  ;;  %v248_v32 = vld [vmem:[%s516_s2] ss:$0 sm:$0xff]  ;;  %p376_p3 = por %p375_p2, %p374_p1 }
   0xa   :  { %v358_v31 = vpack.c.bf16 %v147_v30, %v146_v29  ;;  %v251_v53 = vld [vmem:[%s518_s4] ss:$0 sm:$0xff] }
   0xb   :  { %337 = vmatpush3.bf16.msra.mxu1 %v334_v13  ;;  %p377_p4 = pnand %p376_p3, %p370_p0 }
   0xc   :  { %285 = vmatmul.mubr.msk.f32.vlgmr.msra.gmra.mrb[0].mxu0 %vm34_vm0, %v22_v10  ;;  %339 = vmatprep.subr.bf16.mxu1 %v338_v16 }
   0xf   :  { %341 = vmatpush3.bf16.msra.mxu1 %v338_v16 }
  0x10   :  { %343 = vmatprep.subr.bf16.mxu1 %v342_v19 }
  0x13   :  { %345 = vmatpush3.bf16.msra.mxu1 %v342_v19 }
  0x14   :  { %347 = vmatprep.subr.bf16.mxu1 %v346_v23 }
  0x17   :  { %349 = vmatpush3.bf16.msra.mxu1 %v346_v23 }
  0x18   :  { %351 = vmatprep.subr.bf16.mxu1 %v350_v25 }
  0x1b   :  { %353 = vmatpush3.bf16.msra.mxu1 %v350_v25 }
  0x1c   :  { %355 = vmatprep.subr.bf16.mxu1 %v354_v28 }
  0x1f   :  { %357 = vmatpush3.bf16.msra.mxu1 %v354_v28 }
  0x20   :  { %359 = vmatprep.subr.bf16.mxu1 %v358_v31 }
  0x23   :  { %361 = vmatpush3.bf16.msra.mxu1 %v358_v31 }
  0xdf   :  { %v286_v33 = vpop.f32.mrb[0].mxu0 }
  0xe0   :  { %v113_v34 = vadd.f32 %v286_v33, %v248_v32  ;;  %v107_v35 = vpop.f32.mrb[1].mxu0 }
  0xe1   :  { %v108_v36 = vadd.f32 %v248_v32, %v107_v35 }
  0xe2   :  { %v117_v37 = vmul.f32 %v113_v34, %v113_v34 }
  0xe3   :  { %v116_v38 = vmul.f32 %v108_v36, %v108_v36 }
  0xe4   :  { %v119_v39 = vmul.f32 0.035677407, %v117_v37 }
  0xe5   :  { %v118_v40 = vmul.f32 0.035677407, %v116_v38 }
  0xe6   :  { %v121_v41 = vadd.f32 0.7978846, %v119_v39 }
  0xe7   :  { %v120_v42 = vadd.f32 0.7978846, %v118_v40 }
  0xe8   :  { %v123_v43 = vmul.f32 %v121_v41, %v113_v34 }
  0xe9   :  { %v122_v44 = vmul.f32 %v120_v42, %v108_v36 }
  0xea   :  { %365 = vtanh.f32 %v123_v43 }
  0xeb   :  { %367 = vtanh.f32 %v122_v44 }
  0xf4   :  { %v366_v45 = vpop.eup %365 }
  0xf5   :  { %v368_v46 = vpop.eup %367  ;;  %v127_v47 = vmul.f32 0.5, %v366_v45 }
  0xf6   :  { %v126_v48 = vmul.f32 0.5, %v368_v46 }
  0xf7   :  { %v129_v49 = vadd.f32 0.5, %v127_v47 }
  0xf8   :  { %v128_v50 = vadd.f32 0.5, %v126_v48 }
  0xf9   :  { %v131_v52 = vmul.f32 %v129_v49, %v113_v34 }
  0xfa   :  { %v130_v51 = vmul.f32 %v128_v50, %v108_v36 }
  0xfc   :  { %319 = vmatprep.mubr.f32.mxu1 %v130_v51 }
  0xfd   :  { %320 = vmatmul.mubr.f32.vlgmr.msra.gmra.mrb[0].mxu1 %v131_v52 }
 0x1d0   :  { %v321_v54 = vpop.f32.mrb[0].mxu1 }
 0x1d1   :  { %v227_v55 = vadd.f32 %v321_v54, %v251_v53  ;;  %v221_v56 = vpop.f32.mrb[1].mxu1 }
 0x1d2   :  { %v222_v57 = vadd.f32 %v251_v53, %v221_v56 }
 0x1d3   :  { %231 = vst.msk [vmem:[#allocation2 + $0x8] sm:$0xff] %vm34_vm0, %v227_v55 }
 0x1d4   :  { %230 = vst.msk [vmem:[#allocation2] sm:$0xff] %vm34_vm0, %v222_v57 }
 0x1d5   :  { %380 = shalt.err (!%p377_p4)
}
 0x1d6   :  { %s381_s15 = scalar_lea.hbm %s519_s5, 256 }
 0x1d7   :  { %p382_p5 = scmp.ne.s32.totalorder %s519_s5, %s381_s15  ;;  %p385_p6 = scmp.lt.u32.totalorder %s381_s15, %s519_s5 }
 0x1d9   :  { %p387_p7 = pnand %p385_p6, %p382_p5 }
 0x1db   :  { %390 = shalt.err (!%p387_p7)
}
 0x1dc   :  { %s394_s19 = smov 128   ;;  %s395_s20 = smov 8  }
 0x1dd   :  { %243 = dma.vmem_to_hbm [thread:$0]  %s238_s12, 256, %s519_s5, [#allocation3], %s394_s19, %s394_s19, %s395_s20  }
 0x1de   :  { %391 = dma.done.wait [#allocation3], 256  }
 0x1df   :  { %392 = vsyncadd [#allocation3], 4294967040 }
 0x1e0   :  { %247 = vsyncpa [#allocation3], 1 }

</bundles_post_ra>
